<compile_context>
chip_gen: v6e
topology: v6e:2x2x1
jax: 0.10.0
libtpu: 0.0.40
codegen_flags: <defaults>
</compile_context>

<pallas_src>
import jax
import jax.numpy as jnp
from jax.experimental import pallas as pl
from jax.experimental.pallas import tpu as pltpu


def _round_up(n, m):
    return ((n + m - 1) // m) * m


def feedback_nn_kernel(xT_ref, w1_ref, b1_ref, w2_ref, b2_ref, w3_ref, b3_ref,
                       o_ref):
    """One batch tile in feature-major (weight-stationary) layout.

    xT_ref : [D, TB]   input tile (features on sublanes, batch on lanes)
    w*_ref : PyTorch-style [out, in] weights (VMEM-resident)
    b*_ref : [out, 1]  biases (f32)
    o_ref  : [1, TB]   lane-dense output tile
    """
    # Layer 1: [64, D] @ [D, TB] -> [64, TB]; f32 accumulate, bias+ReLU in f32.
    h1 = jnp.dot(w1_ref[...], xT_ref[...], preferred_element_type=jnp.float32)
    h1 = jnp.maximum(h1 + b1_ref[...], 0.0)

    # Layer 2: [32, 64] @ [64, TB] -> [32, TB]
    h2 = jnp.dot(w2_ref[...], h1, preferred_element_type=jnp.float32)
    h2 = jnp.maximum(h2 + b2_ref[...], 0.0)

    # Layer 3: [1, 32] @ [32, TB] -> [1, TB]  (lane-dense, unmasked stores)
    o = jnp.dot(w3_ref[...], h2, preferred_element_type=jnp.float32) + b3_ref[...]
    o_ref[...] = o.astype(o_ref.dtype)


def feedback_nn(x, params, *, block_batch=512, input_dtype=None):
    """Fused forward pass. x: [B, D]. Returns [B, 1] float32."""
    w1, b1, w2, b2, w3, b3 = params   # PyTorch layout: w [out, in], b [out]
    B, D = x.shape

    in_dt = jnp.dtype(input_dtype) if input_dtype is not None else x.dtype

    # Feature-major input: batch on the lane (fast) axis.
    xT = x.T.astype(in_dt)                       # [D, B]

    # Batch tile: multiple of 128 lanes, large by default (amortizes the
    # ~0.35us/step grid overhead), clamped for small batches.
    TB = min(int(block_batch), _round_up(B, 128))
    TB = _round_up(TB, 128)
    Bp = _round_up(B, TB)
    if Bp != B:
        xT = jnp.pad(xT, ((0, 0), (0, Bp - B)))  # zero rows -> discarded outputs
    grid = (Bp // TB,)

    # Weights/biases: tiny, held VMEM-resident via constant index_map.
    # Layer-1 weight matches x's dtype (native bf16 MXU path when requested);
    # everything downstream stays f32 (no bf16 elementwise — v5e-safe).
    w1c = w1.astype(in_dt)
    b1c = b1.reshape(64, 1).astype(jnp.float32)
    w2c = w2.astype(jnp.float32)
    b2c = b2.reshape(32, 1).astype(jnp.float32)
    w3c = w3.astype(jnp.float32)
    b3c = b3.reshape(1, 1).astype(jnp.float32)

    resident = lambda a: pl.BlockSpec(a.shape, lambda i: (0, 0))

    flops = 2 * Bp * (D * 64 + 64 * 32 + 32 * 1)
    bytes_accessed = (xT.size * xT.dtype.itemsize
                      + sum(a.size * a.dtype.itemsize
                            for a in (w1c, b1c, w2c, b2c, w3c, b3c))
                      + Bp * 4)

    out = pl.pallas_call(
        feedback_nn_kernel,
        out_shape=jax.ShapeDtypeStruct((1, Bp), jnp.float32),
        grid=grid,
        in_specs=[
            pl.BlockSpec((D, TB), lambda i: (0, i)),   # streamed x tiles
            resident(w1c), resident(b1c),
            resident(w2c), resident(b2c),
            resident(w3c), resident(b3c),
        ],
        out_specs=pl.BlockSpec((1, TB), lambda i: (0, i)),
        compiler_params=pltpu.CompilerParams(
            # batch axis shards across TensorCores on v7x; no-op on v5e/v6e
            dimension_semantics=("parallel",),
            # explicit budget: safe on v5e (16 MiB default scoped) and within
            # v7x's 32 MiB default / 64 MiB physical
            vmem_limit_bytes=32 * 1024 * 1024,
        ),
        cost_estimate=pl.CostEstimate(
            flops=flops, transcendentals=0, bytes_accessed=bytes_accessed),
    )(xT, w1c, b1c, w2c, b2c, w3c, b3c)

    return out[:, :B].T.astype(jnp.float32)     # [B, 1]


def init_params(key, input_size):
    """PyTorch-shaped params: Linear(in, out) -> weight [out, in], bias [out];
    init mimics PyTorch's default U(-1/sqrt(in), 1/sqrt(in))."""
    dims = [(input_size, 64), (64, 32), (32, 1)]
    params = []
    for fan_in, fan_out in dims:
        key, kw, kb = jax.random.split(key, 3)
        bound = 1.0 / jnp.sqrt(float(fan_in))
        w = jax.random.uniform(kw, (fan_out, fan_in), jnp.float32,
                               minval=-bound, maxval=bound)
        b = jax.random.uniform(kb, (fan_out,), jnp.float32,
                               minval=-bound, maxval=bound)
        params.extend([w, b])
    return tuple(params)


def feedback_nn_ref(x, params):
    """Pure-JAX reference (matches the PyTorch forward)."""
    w1, b1, w2, b2, w3, b3 = params
    h = jnp.maximum(x @ w1.T + b1, 0.0)
    h = jnp.maximum(h @ w2.T + b2, 0.0)
    return h @ w3.T + b3


if __name__ == "__main__":
    key = jax.random.PRNGKey(0)
    k_params, k_x1, k_x2 = jax.random.split(key, 3)

    input_size = 16  # small synthetic feature dim (X_train.shape[1])
    params = init_params(k_params, input_size)

    # Case 1: tiny batch (single tile, padded to 128 lanes), f32.
    x_small = jax.random.normal(k_x1, (8, input_size), jnp.float32)
    out = jax.block_until_ready(feedback_nn(x_small, params))
    ref = feedback_nn_ref(x_small, params)
    assert out.shape == (8, 1), out.shape
    assert jnp.allclose(out, ref, atol=1e-5, rtol=1e-5), "f32 small-batch mismatch"

    # Case 2: multi-tile grid with a ragged (zero-padded) last tile, f32.
    x_big = jax.random.normal(k_x2, (300, input_size), jnp.float32)
    out = jax.block_until_ready(feedback_nn(x_big, params, block_batch=128))
    ref = feedback_nn_ref(x_big, params)
    assert out.shape == (300, 1), out.shape
    assert jnp.allclose(out, ref, atol=1e-5, rtol=1e-5), "f32 multi-tile mismatch"

    # Case 3: bf16 input stream (halves HBM read traffic), f32 accumulation.
    out_bf16 = jax.block_until_ready(
        feedback_nn(x_big, params, block_batch=128, input_dtype=jnp.bfloat16))
    assert out_bf16.shape == (300, 1), out_bf16.shape
    assert jnp.allclose(out_bf16, ref, atol=5e-2, rtol=5e-2), "bf16 mismatch"

    print("KERNEL_OK")
</pallas_src>

<mosaic_0001>
module attributes {stable_mosaic.version = 11 : i64} {
  func.func @feedback_nn_kernel(%arg0: i32, %arg1: memref<16x128xf32, #tpu.memory_space<vmem>>, %arg2: memref<64x16xf32, #tpu.memory_space<vmem>>, %arg3: memref<64x1xf32, #tpu.memory_space<vmem>>, %arg4: memref<32x64xf32, #tpu.memory_space<vmem>>, %arg5: memref<32x1xf32, #tpu.memory_space<vmem>>, %arg6: memref<1x32xf32, #tpu.memory_space<vmem>>, %arg7: memref<1x1xf32, #tpu.memory_space<vmem>>, %arg8: memref<1x128xf32, #tpu.memory_space<vmem>>) attributes {dimension_semantics = [#tpu.dimension_semantics<parallel>], iteration_bounds = array<i64: 1>, scalar_prefetch = 0 : i64, scratch_operands = 0 : i64, tpu.core_type = #tpu.core_type<tc>, window_params = [{transform_indices = @transform_0, window_bounds = array<i64: 16, 128>}, {pipeline_mode = #tpu.pipeline_mode<synchronous>, transform_indices = @transform_1, window_bounds = array<i64: 64, 16>}, {pipeline_mode = #tpu.pipeline_mode<synchronous>, transform_indices = @transform_2, window_bounds = array<i64: 64, 1>}, {pipeline_mode = #tpu.pipeline_mode<synchronous>, transform_indices = @transform_3, window_bounds = array<i64: 32, 64>}, {pipeline_mode = #tpu.pipeline_mode<synchronous>, transform_indices = @transform_4, window_bounds = array<i64: 32, 1>}, {pipeline_mode = #tpu.pipeline_mode<synchronous>, transform_indices = @transform_5, window_bounds = array<i64: 1, 32>}, {pipeline_mode = #tpu.pipeline_mode<synchronous>, transform_indices = @transform_6, window_bounds = array<i64: 1, 1>}, {transform_indices = @transform_7, window_bounds = array<i64: 1, 128>}]} {
    %c0 = arith.constant 0 : index
    %c0_0 = arith.constant 0 : index
    %0 = vector.load %arg2[%c0, %c0_0] : memref<64x16xf32, #tpu.memory_space<vmem>>, vector<64x16xf32>
    %c0_1 = arith.constant 0 : index
    %c0_2 = arith.constant 0 : index
    %1 = vector.load %arg1[%c0_1, %c0_2] : memref<16x128xf32, #tpu.memory_space<vmem>>, vector<16x128xf32>
    %cst = arith.constant dense<0.000000e+00> : vector<64x128xf32>
    %2 = tpu.matmul %0, %1, %cst {dimension_numbers = #tpu.dot_dimension_numbers<[1], [0], [0], [1], [0, 0, 1, 1], [], []>} : vector<64x16xf32>, vector<16x128xf32>, vector<64x128xf32> -> vector<64x128xf32>
    %c0_3 = arith.constant 0 : index
    %c0_4 = arith.constant 0 : index
    %3 = vector.load %arg3[%c0_3, %c0_4] : memref<64x1xf32, #tpu.memory_space<vmem>>, vector<64x1xf32>
    %4 = vector.broadcast %3 : vector<64x1xf32> to vector<64x128xf32>
    %5 = arith.addf %2, %4 : vector<64x128xf32>
    %cst_5 = arith.constant 0.000000e+00 : f32
    %6 = vector.broadcast %cst_5 : f32 to vector<64x128xf32>
    %7 = arith.maximumf %5, %6 : vector<64x128xf32>
    %c0_6 = arith.constant 0 : index
    %c0_7 = arith.constant 0 : index
    %8 = vector.load %arg4[%c0_6, %c0_7] : memref<32x64xf32, #tpu.memory_space<vmem>>, vector<32x64xf32>
    %cst_8 = arith.constant dense<0.000000e+00> : vector<32x128xf32>
    %9 = tpu.matmul %8, %7, %cst_8 {dimension_numbers = #tpu.dot_dimension_numbers<[1], [0], [0], [1], [0, 0, 1, 1], [], []>} : vector<32x64xf32>, vector<64x128xf32>, vector<32x128xf32> -> vector<32x128xf32>
    %c0_9 = arith.constant 0 : index
    %c0_10 = arith.constant 0 : index
    %10 = vector.load %arg5[%c0_9, %c0_10] : memref<32x1xf32, #tpu.memory_space<vmem>>, vector<32x1xf32>
    %11 = vector.broadcast %10 : vector<32x1xf32> to vector<32x128xf32>
    %12 = arith.addf %9, %11 : vector<32x128xf32>
    %cst_11 = arith.constant 0.000000e+00 : f32
    %13 = vector.broadcast %cst_11 : f32 to vector<32x128xf32>
    %14 = arith.maximumf %12, %13 : vector<32x128xf32>
    %c0_12 = arith.constant 0 : index
    %c0_13 = arith.constant 0 : index
    %15 = vector.load %arg6[%c0_12, %c0_13] : memref<1x32xf32, #tpu.memory_space<vmem>>, vector<1x32xf32>
    %cst_14 = arith.constant dense<0.000000e+00> : vector<1x128xf32>
    %16 = tpu.matmul %15, %14, %cst_14 {dimension_numbers = #tpu.dot_dimension_numbers<[1], [0], [0], [1], [0, 0, 1, 1], [], []>} : vector<1x32xf32>, vector<32x128xf32>, vector<1x128xf32> -> vector<1x128xf32>
    %c0_15 = arith.constant 0 : index
    %c0_16 = arith.constant 0 : index
    %17 = vector.load %arg7[%c0_15, %c0_16] : memref<1x1xf32, #tpu.memory_space<vmem>>, vector<1x1xf32>
    %18 = vector.broadcast %17 : vector<1x1xf32> to vector<1x128xf32>
    %19 = arith.addf %16, %18 : vector<1x128xf32>
    %c0_17 = arith.constant 0 : index
    %c0_18 = arith.constant 0 : index
    %20 = vector.load %arg8[%c0_17, %c0_18] : memref<1x128xf32, #tpu.memory_space<vmem>>, vector<1x128xf32>
    tpu.vector_store %arg8[%c0_17, %c0_18], %19 {strides = array<i32>} : memref<1x128xf32, #tpu.memory_space<vmem>>, vector<1x128xf32>,
    return
  }
  func.func @transform_0(%arg0: i32) -> (i32, i32) {
    %c0_i32 = arith.constant 0 : i32
    %c0_i32_0 = arith.constant 0 : i32
    return %c0_i32, %arg0 : i32, i32
  }
  func.func @transform_1(%arg0: i32) -> (i32, i32) {
    %c0_i32 = arith.constant 0 : i32
    %c0_i32_0 = arith.constant 0 : i32
    %c0_i32_1 = arith.constant 0 : i32
    return %c0_i32, %c0_i32_0 : i32, i32
  }
  func.func @transform_2(%arg0: i32) -> (i32, i32) {
    %c0_i32 = arith.constant 0 : i32
    %c0_i32_0 = arith.constant 0 : i32
    %c0_i32_1 = arith.constant 0 : i32
    return %c0_i32, %c0_i32_0 : i32, i32
  }
  func.func @transform_3(%arg0: i32) -> (i32, i32) {
    %c0_i32 = arith.constant 0 : i32
    %c0_i32_0 = arith.constant 0 : i32
    %c0_i32_1 = arith.constant 0 : i32
    return %c0_i32, %c0_i32_0 : i32, i32
  }
  func.func @transform_4(%arg0: i32) -> (i32, i32) {
    %c0_i32 = arith.constant 0 : i32
    %c0_i32_0 = arith.constant 0 : i32
    %c0_i32_1 = arith.constant 0 : i32
    return %c0_i32, %c0_i32_0 : i32, i32
  }
  func.func @transform_5(%arg0: i32) -> (i32, i32) {
    %c0_i32 = arith.constant 0 : i32
    %c0_i32_0 = arith.constant 0 : i32
    %c0_i32_1 = arith.constant 0 : i32
    return %c0_i32, %c0_i32_0 : i32, i32
  }
  func.func @transform_6(%arg0: i32) -> (i32, i32) {
    %c0_i32 = arith.constant 0 : i32
    %c0_i32_0 = arith.constant 0 : i32
    %c0_i32_1 = arith.constant 0 : i32
    return %c0_i32, %c0_i32_0 : i32, i32
  }
  func.func @transform_7(%arg0: i32) -> (i32, i32) {
    %c0_i32 = arith.constant 0 : i32
    %c0_i32_0 = arith.constant 0 : i32
    return %c0_i32, %arg0 : i32, i32
  }
}

</mosaic_0001>

<bundles_post_ra>
// kernel: tpu_custom_call.1
= control target key start
LH: loop header
LB: loop body
LE: loop exit
PB: predicated region body
PF: predicated region fallthrough
CT: control target
= control target key end

     0   :  { %s715_s0 = inlined_call_operand.vmem [shape: f32[16,128], index: 0, kind: input, shape index: {}]   ;;  %s716_s1 = inlined_call_operand.vmem [shape: f32[64,16], index: 1, kind: input, shape index: {}]   ;;  %s717_s2 = inlined_call_operand.vmem [shape: f32[64,1], index: 2, kind: input, shape index: {}]   ;;  %s718_s3 = inlined_call_operand.vmem [shape: f32[32,64], index: 3, kind: input, shape index: {}]   ;;  %s719_s4 = inlined_call_operand.vmem [shape: f32[32,1], index: 4, kind: input, shape index: {}]   ;;  %s720_s5 = inlined_call_operand.vmem [shape: f32[1,32], index: 5, kind: input, shape index: {}]   ;;  %s721_s6 = inlined_call_operand.<no memory space> [shape: f32[1,1], index: 6, kind: input, shape index: {}]   ;;  %s722_s7 = inlined_call_operand.hbm [shape: f32[1,128], index: 7, kind: output, shape index: {}]  }
   0x1   :  { %v12_v0 = vstv %s721_s6 }
   0x2   :  { %13 = vst [vmem:[#allocation2] sm:$0x1] %v12_v0 }
   0x3   :  { %v38_v1 = vld [vmem:[%s715_s0 + $0x8] sm:$0xff]  ;;  %v37_v2 = vld [vmem:[%s715_s0] sm:$0xff]  ;;  %vm87_vm0 = vcmask 130048   ;;  %v572_v5 = vmov 0   ;;  %v31_v6 = vld [vmem:[%s716_s1 + $0x10] sm:$0xff] }
   0x4   :  { %v29_v3 = vld [vmem:[%s716_s1] sm:$0xff]  ;;  %495 = vmatprep.subr.mxu0 %v38_v1  ;;  %v30_v4 = vld [vmem:[%s716_s1 + $0x8] sm:$0xff]  ;;  %548 = vset.pattern.permute.xlu0 %v572_v5  ;;  %v46_v7 = vld [vmem:[%s717_s2 + $0x38] sm:$0xff] }
   0x5   :  { %499 = vmatprep.mubr.msk.f32.mxu0 %vm87_vm0, %v29_v3  ;;  %496 = vmatpush3.msra.mxu0 %v38_v1  ;;  %v44_v8 = vld [vmem:[%s717_s2 + $0x28] sm:$0xff]  ;;  %v45_v9 = vld [vmem:[%s717_s2 + $0x30] sm:$0xff]  ;;  %v32_v10 = vld [vmem:[%s716_s1 + $0x18] sm:$0xff] }
   0x6   :  { %497 = vmatprep.subr.mxu0 %v37_v2  ;;  %549 = vset.pattern.permute.xlu1 %v572_v5  ;;  %v43_v11 = vld [vmem:[%s717_s2 + $0x20] sm:$0xff] }
   0x7   :  { %498 = vmatpush3.msra.mxu0 %v37_v2  ;;  %84 = vperm.xlu0 %548, %v46_v7   ;;  %v33_v12 = vld [vmem:[%s716_s1 + $0x20] sm:$0xff] }
   0x8   :  { %500 = vmatmul.mubr.msk.f32.vlgmr.msra.gmra.mxu0 %vm87_vm0, %v30_v4  ;;  %74 = vperm.xlu1 %549, %v44_v8  }
   0x9   :  { %502 = vmatprep.mubr.msk.f32.mxu0 %vm87_vm0, %v31_v6 }
   0xa   :  { %14 = vsyncpa [#allocation4], 0  ;;  %v42_v13 = vld [vmem:[%s717_s2 + $0x18] sm:$0xff]  ;;  %v34_v14 = vld [vmem:[%s716_s1 + $0x28] sm:$0xff]  ;;  %vm253_vm1 = vcmask 523264   ;;  %v573_v61 = vmov 0.0  }
   0xb   :  { %79 = vperm.xlu0 %548, %v45_v9   ;;  %v41_v15 = vld [vmem:[%s717_s2 + $0x10] sm:$0xff]  ;;  %v40_v17 = vld [vmem:[%s717_s2 + $0x8] sm:$0xff]  ;;  %v36_v18 = vld [vmem:[%s716_s1 + $0x38] sm:$0xff]  ;;  %533 = vmatprep.subr.mxu0 %v573_v61  ;;  %vm574_vm2 = vmmov 0   ;;  %vm366_vm3 = vcmask 261120   ;;  %s575_s26 = smov [#allocation3]  }
   0xc   :  { %503 = vmatmul.mubr.msk.f32.gmra.mxu0 %vm87_vm0, %v32_v10  ;;  %69 = vperm.xlu1 %549, %v43_v11   ;;  %v35_v16 = vld [vmem:[%s716_s1 + $0x30] sm:$0xff]  ;;  %v39_v19 = vld [vmem:[%s717_s2] sm:$0xff]  ;;  %v232_v20 = vld [vmem:[%s719_s4 + $0x18] sm:$0xff]  ;;  %s447_s27 = sshll.u32 %s575_s26, 4  ;;  %s448_s27 = int_to_ptr.vmem [resolvable:$true] %s447_s27 }
   0xd   :  { %505 = vmatprep.mubr.msk.f32.mxu0 %vm87_vm0, %v33_v12  ;;  %v231_v21 = vld [vmem:[%s719_s4 + $0x10] sm:$0xff]  ;;  %v230_v22 = vld [vmem:[%s719_s4 + $0x8] sm:$0xff]  ;;  %v229_v23 = vld [vmem:[%s719_s4] sm:$0xff]  ;;  %s550_s28 = scalar_lea.vmem %s448_s27, 16  ;;  %s554_s29 = scalar_lea.vmem %s448_s27, 32 }
   0xe   :  { %v356_v24 = vld [vmem:[#allocation2] sm:$0x1]  ;;  %v226_v58 = vld [vmem:[%s718_s3 + $0x8] sm:$0xff]  ;;  %v227_v59 = vld [vmem:[%s718_s3 + $0x10] sm:$0xff]  ;;  %p551_p0 = scmp.ne.s32.totalorder %s448_s27, %s550_s28  ;;  %p555_p1 = scmp.lt.s32.totalorder %s448_s27, %s448_s27 }
   0xf   :  { %64 = vperm.xlu0 %548, %v42_v13   ;;  %v225_v25 = vld [vmem:[%s718_s3] sm:$0xff]  ;;  %v228_v60 = vld [vmem:[%s718_s3 + $0x18] sm:$0xff]  ;;  %p556_p2 = scmp.lt.s32.totalorder %s554_s29, %s550_s28 }
  0x10   :  { %506 = vmatmul.mubr.msk.f32.gmra.mxu0 %vm87_vm0, %v34_v14  ;;  %59 = vperm.xlu1 %549, %v41_v15   ;;  %v355_v14 = vld [vmem:[%s720_s5] sm:$0x1]  ;;  %v362_v15 = vlaneseq }
  0x11   :  { %508 = vmatprep.mubr.msk.f32.mxu0 %vm87_vm0, %v35_v16  ;;  %527 = vmatprep.mubr.msk.f32.mxu1 %vm253_vm1, %v225_v25  ;;  %p557_p3 = por %p556_p2, %p555_p1 }
  0x12   :  { %v363_v16 = vshrl.u32 %v362_v15, 7 }
  0x13   :  { %54 = vperm.xlu0 %548, %v40_v17   ;;  %p558_p4 = pnand %p557_p3, %p551_p0 }
  0x14   :  { %509 = vmatmul.mubr.msk.f32.gmra.mxu0 %vm87_vm0, %v36_v18  ;;  %49 = vperm.xlu1 %549, %v39_v19   ;;  %v364_v17 = vsub.s32 0, %v363_v16 }
  0x15   :  { %541 = vmatprep.mubr.msk.f32.mxu0 %vm574_vm2, %v573_v61 }
  0x17   :  { %250 = vperm.xlu0 %548, %v232_v20  }
  0x18   :  { %245 = vperm.xlu1 %549, %v231_v21  }
  0x1b   :  { %240 = vperm.xlu0 %548, %v230_v22  }
  0x1c   :  { %235 = vperm.xlu1 %549, %v229_v23  }
  0x1f   :  { %359 = vperm.xlu0 %548, %v356_v24  }
  0x82   :  { %v85_v28 = vpop.permute.xlu0 %84 }
  0x83   :  { %v75_v29 = vpop.permute.xlu1 %74 }
  0x86   :  { %v80_v33 = vpop.permute.xlu0 %79 }
  0x87   :  { %v70_v34 = vpop.permute.xlu1 %69 }
  0x8a   :  { %v65_v42 = vpop.permute.xlu0 %64 }
  0x8b   :  { %v60_v43 = vpop.permute.xlu1 %59 }
  0x8e   :  { %v55_v50 = vpop.permute.xlu0 %54 }
  0x8f   :  { %v50_v51 = vpop.permute.xlu1 %49 }
  0x92   :  { %v251_v62 = vpop.permute.xlu0 %250 }
  0x93   :  { %v246_v0 = vpop.permute.xlu1 %245 }
  0x96   :  { %v241_v4 = vpop.permute.xlu0 %240 }
  0x97   :  { %v236_v9 = vpop.permute.xlu1 %235 }
  0x9a   :  { %v360_v18 = vpop.permute.xlu0 %359 }
  0x9b   :  { %v365_v19 = vrot.slane %v360_v18, %v364_v17 }
  0xc8   :  { %v501_v26 = vpop.f32.mrf.mxu0 }
  0xc9   :  { %v184_v52 = vadd.f32 %v501_v26, %v55_v50 }
  0xca   :  { %v178_v27 = vpop.f32.mrf.mxu0 }
  0xcb   :  { %v179_v54 = vadd.f32 %v178_v27, %v50_v51  ;;  %v218_v56 = vmax.f32 %v184_v52, 0.0 }
  0xcc   :  { %v504_v30 = vpop.f32.mrf.mxu0 }
  0xcd   :  { %v194_v46 = vadd.f32 %v504_v30, %v65_v42  ;;  %v217_v57 = vmax.f32 %v179_v54, 0.0 }
  0xce   :  { %v188_v31 = vpop.f32.mrf.mxu0 }
  0xcf   :  { %v189_v48 = vadd.f32 %v188_v31, %v60_v43  ;;  %v220_v53 = vmax.f32 %v194_v46, 0.0 }
  0xd0   :  { %v507_v32 = vpop.f32.mrf.mxu0 }
  0xd1   :  { %v204_v39 = vadd.f32 %v507_v32, %v75_v29  ;;  %v219_v55 = vmax.f32 %v189_v48, 0.0 }
  0xd2   :  { %v198_v35 = vpop.f32.mrf.mxu0 }
  0xd3   :  { %v199_v44 = vadd.f32 %v198_v35, %v70_v34  ;;  %v222_v47 = vmax.f32 %v204_v39, 0.0 }
  0xd4   :  { %v510_v36 = vpop.f32.mrf.mxu0 }
  0xd5   :  { %v214_v37 = vadd.f32 %v510_v36, %v85_v28  ;;  %v221_v49 = vmax.f32 %v199_v44, 0.0 }
  0xd6   :  { %v208_v38 = vpop.f32.mrf.mxu0 }
  0xd7   :  { %v224_v40 = vmax.f32 %v214_v37, 0.0  ;;  %v209_v41 = vadd.f32 %v208_v38, %v80_v33 }
  0xd9   :  { %v223_v45 = vmax.f32 %v209_v41, 0.0  ;;  %511 = vmatprep.subr.mxu1 %v224_v40 }
  0xda   :  { %512 = vmatpush3.msra.mxu1 %v224_v40 }
  0xdb   :  { %513 = vmatprep.subr.mxu1 %v223_v45 }
  0xdc   :  { %514 = vmatpush3.msra.mxu1 %v223_v45 }
  0xdd   :  { %515 = vmatprep.subr.mxu1 %v222_v47 }
  0xde   :  { %516 = vmatpush3.msra.mxu1 %v222_v47 }
  0xdf   :  { %517 = vmatprep.subr.mxu1 %v221_v49 }
  0xe0   :  { %518 = vmatpush3.msra.mxu1 %v221_v49 }
  0xe1   :  { %519 = vmatprep.subr.mxu1 %v220_v53 }
  0xe2   :  { %520 = vmatpush3.msra.mxu1 %v220_v53 }
  0xe3   :  { %521 = vmatprep.subr.mxu1 %v219_v55 }
  0xe4   :  { %522 = vmatpush3.msra.mxu1 %v219_v55 }
  0xe5   :  { %523 = vmatprep.subr.mxu1 %v218_v56 }
  0xe6   :  { %524 = vmatpush3.msra.mxu1 %v218_v56 }
  0xe7   :  { %525 = vmatprep.subr.mxu1 %v217_v57 }
  0xe8   :  { %526 = vmatpush3.msra.mxu1 %v217_v57 }
  0xe9   :  { %528 = vmatmul.mubr.msk.f32.vlgmr.msra.gmra.mxu1 %vm253_vm1, %v226_v58 }
  0xea   :  { %530 = vmatprep.mubr.msk.f32.mxu1 %vm253_vm1, %v227_v59 }
  0xed   :  { %531 = vmatmul.mubr.msk.f32.gmra.mxu1 %vm253_vm1, %v228_v60 }
 0x1a9   :  { %v529_v63 = vpop.f32.mrf.mxu1 }
 0x1aa   :  { %v338_v6 = vadd.f32 %v529_v63, %v241_v4 }
 0x1ab   :  { %v332_v1 = vpop.f32.mrf.mxu1 }
 0x1ac   :  { %v333_v10 = vadd.f32 %v332_v1, %v236_v9  ;;  %v352_v12 = vmax.f32 %v338_v6, 0.0 }
 0x1ad   :  { %v532_v2 = vpop.f32.mrf.mxu1 }
 0x1ae   :  { %v348_v3 = vadd.f32 %v532_v2, %v251_v62  ;;  %v351_v13 = vmax.f32 %v333_v10, 0.0 }
 0x1af   :  { %v342_v5 = vpop.f32.mrf.mxu1 }
 0x1b0   :  { %v354_v7 = vmax.f32 %v348_v3, 0.0  ;;  %v343_v8 = vadd.f32 %v342_v5, %v246_v0 }
 0x1b2   :  { %v353_v11 = vmax.f32 %v343_v8, 0.0  ;;  %534 = vmatpush3.msra.mxu0 %v354_v7 }
 0x1b3   :  { %535 = vmatprep.subr.mxu0 %v573_v61 }
 0x1b4   :  { %536 = vmatpush3.msra.mxu0 %v353_v11 }
 0x1b5   :  { %537 = vmatprep.subr.mxu0 %v573_v61 }
 0x1b6   :  { %538 = vmatpush3.msra.mxu0 %v352_v12 }
 0x1b7   :  { %539 = vmatprep.subr.mxu0 %v573_v61 }
 0x1b8   :  { %540 = vmatpush3.msra.mxu0 %v351_v13 }
 0x1b9   :  { %542 = vmatmul.mubr.msk.f32.vlgmr.msra.gmra.mxu0 %vm366_vm3, %v355_v14 }
 0x279   :  { %v436_v20 = vpop.f32.mrf.mxu0 }
 0x27a   :  { %v437_v21 = vadd.f32 %v436_v20, %v365_v19 }
 0x27b   :  { %v543_v22 = vpop.f32.mrf.mxu0 }
 0x27c   :  { %440 = vst [vmem:[#allocation3] sm:$0x1] %v437_v21 }
 0x27d   :  { %561 = shalt.err (!%p558_p4)
}
 0x27e   :  { %450 = dma.vmem_to_hbm [thread:$0]  %s448_s27, 16, %s722_s7, [#allocation4]  }
 0x27f   :  { %570 = dma.done.wait [#allocation4], 16  }
 0x280   :  { %571 = vsyncadd [#allocation4], 4294967280 }
 0x281   :  { %454 = vsyncpa [#allocation4], 1 }

</bundles_post_ra>
